<compile_context>
chip_gen: v6e
topology: v6e:2x2x1
jax: 0.10.0
libtpu: 0.0.40
codegen_flags: <defaults>
</compile_context>

<pallas_src>
import jax
import jax.numpy as jnp
from jax.experimental import pallas as pl
from jax.experimental.pallas import tpu as pltpu

HIDDEN = 100       # ffn_hidden_size from the PyTorch module
HIDDEN_PAD = 128   # lane-dense padded width (columns 100..127 are exact zeros)


def _round_up(x, m):
    return (x + m - 1) // m * m


def _choose_tile_m(B):
    # Split the batch in (at least) two so v7x's two TensorCores both get work;
    # cap at 2048 rows so x/out double-buffers + resident weights stay well
    # inside the 32 MiB scoped-VMEM default on every generation.
    tm = _round_up(-(-B // 2), 8)   # ceil(B/2) rounded up to a sublane multiple
    return max(8, min(tm, 2048))


def gcn_kernel(x_ref, w1_ref, w2_ref, w3_ref, w4_ref, b_ref, o_ref):
    # Four fused Linear+ReLU layers: bf16 MXU operands, f32 accumulation,
    # f32 bias-add + ReLU on the VPU. b_ref is one (8,128) slab; row i holds
    # the bias of layer i+1 (rows 4..7 and lanes 100..127 are zeros).
    h = jnp.dot(x_ref[...].astype(jnp.bfloat16), w1_ref[...],
                preferred_element_type=jnp.float32)
    h = jnp.maximum(h + b_ref[0:1, :], 0.0)

    h = jnp.dot(h.astype(jnp.bfloat16), w2_ref[...],
                preferred_element_type=jnp.float32)
    h = jnp.maximum(h + b_ref[1:2, :], 0.0)

    h = jnp.dot(h.astype(jnp.bfloat16), w3_ref[...],
                preferred_element_type=jnp.float32)
    h = jnp.maximum(h + b_ref[2:3, :], 0.0)

    h = jnp.dot(h.astype(jnp.bfloat16), w4_ref[...],
                preferred_element_type=jnp.float32)
    h = jnp.maximum(h + b_ref[3:4, :], 0.0)

    o_ref[...] = h.astype(o_ref.dtype)


def prepare_params(params):
    """One-time preparation: pad-by-position to 128 lanes, cast weights to bf16,
    pack the four biases into a single resident (8,128) f32 slab."""
    def pad_to(a, rows, cols, dtype):
        r, c = a.shape
        return jnp.pad(a, ((0, rows - r), (0, cols - c))).astype(dtype)

    dim_in = params["w1"].shape[0]
    prepared = {
        "dim_in": dim_in,
        "w1": pad_to(params["w1"], dim_in, HIDDEN_PAD, jnp.bfloat16),
        "w2": pad_to(params["w2"], HIDDEN_PAD, HIDDEN_PAD, jnp.bfloat16),
        "w3": pad_to(params["w3"], HIDDEN_PAD, HIDDEN_PAD, jnp.bfloat16),
        "w4": pad_to(params["w4"], HIDDEN_PAD, HIDDEN_PAD, jnp.bfloat16),
    }
    b = jnp.concatenate([params[f"b{i}"] for i in (1, 2, 3, 4)], axis=0)  # (4,100)
    prepared["b"] = pad_to(b, 8, HIDDEN_PAD, jnp.float32)
    return prepared


def gcn_forward(x, prepared, *, tile_m=None, out_dtype=jnp.float32, trim=True):
    """x: (B, dim_in) float. prepared: output of prepare_params().

    out_dtype=jnp.bfloat16 halves the dominant output HBM stream (biggest v5e
    win). trim=False returns the padded (b_pad, 128) slab so no extra
    [:B, :100] copy pass is spent; slice where it fuses into the consumer."""
    B, dim_in = x.shape
    assert prepared["dim_in"] == dim_in, "params prepared for a different dim_in"

    if tile_m is None:
        tile_m = _choose_tile_m(B)
    b_pad = _round_up(B, tile_m)
    x_p = x if b_pad == B else jnp.pad(x, ((0, b_pad - B), (0, 0)))

    grid = (b_pad // tile_m,)
    args = (x_p, prepared["w1"], prepared["w2"], prepared["w3"],
            prepared["w4"], prepared["b"])

    in_specs = [
        pl.BlockSpec((tile_m, dim_in), lambda i: (i, 0)),           # x: batch-tiled
        pl.BlockSpec((dim_in, HIDDEN_PAD), lambda i: (0, 0)),       # w1: resident
        pl.BlockSpec((HIDDEN_PAD, HIDDEN_PAD), lambda i: (0, 0)),   # w2: resident
        pl.BlockSpec((HIDDEN_PAD, HIDDEN_PAD), lambda i: (0, 0)),   # w3: resident
        pl.BlockSpec((HIDDEN_PAD, HIDDEN_PAD), lambda i: (0, 0)),   # w4: resident
        pl.BlockSpec((8, HIDDEN_PAD), lambda i: (0, 0)),            # packed biases
    ]
    out_spec = pl.BlockSpec((tile_m, HIDDEN_PAD), lambda i: (i, 0))

    out_itemsize = jnp.dtype(out_dtype).itemsize
    flops = 2 * b_pad * (dim_in * HIDDEN_PAD + 3 * HIDDEN_PAD * HIDDEN_PAD)
    bytes_accessed = (
        b_pad * dim_in * x_p.dtype.itemsize                 # x
        + b_pad * HIDDEN_PAD * out_itemsize                 # out
        + (dim_in + 3 * HIDDEN_PAD) * HIDDEN_PAD * 2        # weights (bf16)
        + 8 * HIDDEN_PAD * 4                                # packed biases (f32)
    )

    out = pl.pallas_call(
        gcn_kernel,
        out_shape=jax.ShapeDtypeStruct((b_pad, HIDDEN_PAD), out_dtype),
        grid_spec=pltpu.PrefetchScalarGridSpec(
            num_scalar_prefetch=0,
            grid=grid,
            in_specs=in_specs,
            out_specs=out_spec,
        ),
        compiler_params=pltpu.CompilerParams(
            dimension_semantics=("parallel",),
            vmem_limit_bytes=32 * 1024 * 1024),
        cost_estimate=pl.CostEstimate(
            flops=flops, transcendentals=0, bytes_accessed=bytes_accessed),
    )(*args)

    if trim:
        return out[:B, :HIDDEN]   # module-exact shape; costs one extra HBM pass
    return out                    # padded slab: let the consumer fuse the trim


def init_params(key, dim_in):
    """Mirror nn.Linear init; store weight transposed as (in, out), bias (1, out)."""
    def linear(k, fan_in, fan_out):
        kw, kb = jax.random.split(k)
        bound = 1.0 / jnp.sqrt(fan_in)
        w_pt = jax.random.uniform(kw, (fan_out, fan_in), jnp.float32, -bound, bound)
        b = jax.random.uniform(kb, (fan_out,), jnp.float32, -bound, bound)
        return w_pt.T, b.reshape(1, fan_out)

    k1, k2, k3, k4 = jax.random.split(key, 4)
    w1, b1 = linear(k1, dim_in, HIDDEN)
    w2, b2 = linear(k2, HIDDEN, HIDDEN)
    w3, b3 = linear(k3, HIDDEN, HIDDEN)
    w4, b4 = linear(k4, HIDDEN, HIDDEN)
    return {"w1": w1, "b1": b1, "w2": w2, "b2": b2,
            "w3": w3, "b3": b3, "w4": w4, "b4": b4}


def gcn_reference_f32(x, params):
    """Pure f32 reference (exact PyTorch-module semantics)."""
    h = x
    for i in (1, 2, 3, 4):
        h = jnp.maximum(h @ params[f"w{i}"] + params[f"b{i}"], 0.0)
    return h


def gcn_reference_matched(x, params):
    """Same bf16-operand / f32-accumulate recipe as the kernel (the padded
    lanes are exact zeros, so they contribute nothing)."""
    h = x.astype(jnp.bfloat16)
    for i in (1, 2, 3, 4):
        h = jnp.dot(h, params[f"w{i}"].astype(jnp.bfloat16),
                    preferred_element_type=jnp.float32)
        h = jnp.maximum(h + params[f"b{i}"], 0.0)
        if i < 4:
            h = h.astype(jnp.bfloat16)
    return h


if __name__ == "__main__":
    key = jax.random.PRNGKey(0)
    k_x, k_p = jax.random.split(key)

    B, dim_in, dim_out = 8, 32, 16  # dim_out/sigmoid unused by forward (matches the module)
    x = jax.random.normal(k_x, (B, dim_in), dtype=jnp.float32)
    params = init_params(k_p, dim_in)
    prepared = prepare_params(params)   # padded bf16 weights / packed bias, cached

    # Module-exact path: f32 output, trimmed to (B, 100).
    out = jax.block_until_ready(gcn_forward(x, prepared))
    assert out.shape == (B, HIDDEN)

    ref_matched = gcn_reference_matched(x, params)   # same bf16/f32 recipe -> tight
    ref_f32 = gcn_reference_f32(x, params)           # module semantics -> bf16-rounding tol
    assert jnp.allclose(out, ref_matched, atol=1e-3, rtol=1e-3)
    assert jnp.allclose(out, ref_f32, atol=5e-2, rtol=5e-2)

    # Fast path: bf16 output stream, no post-kernel column-slice pass.
    out_fast = jax.block_until_ready(
        gcn_forward(x, prepared, out_dtype=jnp.bfloat16, trim=False))
    assert out_fast.shape[-1] == HIDDEN_PAD
    assert jnp.allclose(out_fast[:B, :HIDDEN].astype(jnp.float32),
                        ref_f32, atol=5e-2, rtol=5e-2)

    print("KERNEL_OK")
</pallas_src>

<mosaic_0001>
module attributes {stable_mosaic.version = 11 : i64} {
  func.func @gcn_kernel(%arg0: i32, %arg1: memref<8x32xf32, #tpu.memory_space<vmem>>, %arg2: memref<32x128xbf16, #tpu.memory_space<vmem>>, %arg3: memref<128x128xbf16, #tpu.memory_space<vmem>>, %arg4: memref<128x128xbf16, #tpu.memory_space<vmem>>, %arg5: memref<128x128xbf16, #tpu.memory_space<vmem>>, %arg6: memref<8x128xf32, #tpu.memory_space<vmem>>, %arg7: memref<8x128xf32, #tpu.memory_space<vmem>>) attributes {dimension_semantics = [#tpu.dimension_semantics<parallel>], iteration_bounds = array<i64: 1>, scalar_prefetch = 0 : i64, scratch_operands = 0 : i64, tpu.core_type = #tpu.core_type<tc>, window_params = [{transform_indices = @transform_0, window_bounds = array<i64: 8, 32>}, {pipeline_mode = #tpu.pipeline_mode<synchronous>, transform_indices = @transform_1, window_bounds = array<i64: 32, 128>}, {pipeline_mode = #tpu.pipeline_mode<synchronous>, transform_indices = @transform_2, window_bounds = array<i64: 128, 128>}, {pipeline_mode = #tpu.pipeline_mode<synchronous>, transform_indices = @transform_3, window_bounds = array<i64: 128, 128>}, {pipeline_mode = #tpu.pipeline_mode<synchronous>, transform_indices = @transform_4, window_bounds = array<i64: 128, 128>}, {pipeline_mode = #tpu.pipeline_mode<synchronous>, transform_indices = @transform_5, window_bounds = array<i64: 8, 128>}, {transform_indices = @transform_6, window_bounds = array<i64: 8, 128>}]} {
    %c0 = arith.constant 0 : index
    %c0_0 = arith.constant 0 : index
    %0 = vector.load %arg1[%c0, %c0_0] : memref<8x32xf32, #tpu.memory_space<vmem>>, vector<8x32xf32>
    %1 = arith.truncf %0 : vector<8x32xf32> to vector<8x32xbf16>
    %c0_1 = arith.constant 0 : index
    %c0_2 = arith.constant 0 : index
    %2 = vector.load %arg2[%c0_1, %c0_2] : memref<32x128xbf16, #tpu.memory_space<vmem>>, vector<32x128xbf16>
    %cst = arith.constant dense<0.000000e+00> : vector<8x128xf32>
    %3 = tpu.matmul %1, %2, %cst {dimension_numbers = #tpu.dot_dimension_numbers<[1], [0], [0], [1], [0, 0, 1, 1], [], []>} : vector<8x32xbf16>, vector<32x128xbf16>, vector<8x128xf32> -> vector<8x128xf32>
    %c0_3 = arith.constant 0 : index
    %c0_4 = arith.constant 0 : index
    %4 = vector.load %arg6[%c0_3, %c0_4] : memref<8x128xf32, #tpu.memory_space<vmem>>, vector<1x128xf32>
    %5 = vector.broadcast %4 : vector<1x128xf32> to vector<8x128xf32>
    %6 = arith.addf %3, %5 : vector<8x128xf32>
    %cst_5 = arith.constant 0.000000e+00 : f32
    %7 = vector.broadcast %cst_5 : f32 to vector<8x128xf32>
    %8 = arith.maximumf %6, %7 : vector<8x128xf32>
    %9 = arith.truncf %8 : vector<8x128xf32> to vector<8x128xbf16>
    %c0_6 = arith.constant 0 : index
    %c0_7 = arith.constant 0 : index
    %10 = vector.load %arg3[%c0_6, %c0_7] : memref<128x128xbf16, #tpu.memory_space<vmem>>, vector<128x128xbf16>
    %cst_8 = arith.constant dense<0.000000e+00> : vector<8x128xf32>
    %11 = tpu.matmul %9, %10, %cst_8 {dimension_numbers = #tpu.dot_dimension_numbers<[1], [0], [0], [1], [0, 0, 1, 1], [], []>} : vector<8x128xbf16>, vector<128x128xbf16>, vector<8x128xf32> -> vector<8x128xf32>
    %c1 = arith.constant 1 : index
    %c0_9 = arith.constant 0 : index
    %12 = vector.load %arg6[%c1, %c0_9] : memref<8x128xf32, #tpu.memory_space<vmem>>, vector<1x128xf32>
    %13 = vector.broadcast %12 : vector<1x128xf32> to vector<8x128xf32>
    %14 = arith.addf %11, %13 : vector<8x128xf32>
    %cst_10 = arith.constant 0.000000e+00 : f32
    %15 = vector.broadcast %cst_10 : f32 to vector<8x128xf32>
    %16 = arith.maximumf %14, %15 : vector<8x128xf32>
    %17 = arith.truncf %16 : vector<8x128xf32> to vector<8x128xbf16>
    %c0_11 = arith.constant 0 : index
    %c0_12 = arith.constant 0 : index
    %18 = vector.load %arg4[%c0_11, %c0_12] : memref<128x128xbf16, #tpu.memory_space<vmem>>, vector<128x128xbf16>
    %cst_13 = arith.constant dense<0.000000e+00> : vector<8x128xf32>
    %19 = tpu.matmul %17, %18, %cst_13 {dimension_numbers = #tpu.dot_dimension_numbers<[1], [0], [0], [1], [0, 0, 1, 1], [], []>} : vector<8x128xbf16>, vector<128x128xbf16>, vector<8x128xf32> -> vector<8x128xf32>
    %c2 = arith.constant 2 : index
    %c0_14 = arith.constant 0 : index
    %20 = vector.load %arg6[%c2, %c0_14] : memref<8x128xf32, #tpu.memory_space<vmem>>, vector<1x128xf32>
    %21 = vector.broadcast %20 : vector<1x128xf32> to vector<8x128xf32>
    %22 = arith.addf %19, %21 : vector<8x128xf32>
    %cst_15 = arith.constant 0.000000e+00 : f32
    %23 = vector.broadcast %cst_15 : f32 to vector<8x128xf32>
    %24 = arith.maximumf %22, %23 : vector<8x128xf32>
    %25 = arith.truncf %24 : vector<8x128xf32> to vector<8x128xbf16>
    %c0_16 = arith.constant 0 : index
    %c0_17 = arith.constant 0 : index
    %26 = vector.load %arg5[%c0_16, %c0_17] : memref<128x128xbf16, #tpu.memory_space<vmem>>, vector<128x128xbf16>
    %cst_18 = arith.constant dense<0.000000e+00> : vector<8x128xf32>
    %27 = tpu.matmul %25, %26, %cst_18 {dimension_numbers = #tpu.dot_dimension_numbers<[1], [0], [0], [1], [0, 0, 1, 1], [], []>} : vector<8x128xbf16>, vector<128x128xbf16>, vector<8x128xf32> -> vector<8x128xf32>
    %c3 = arith.constant 3 : index
    %c0_19 = arith.constant 0 : index
    %28 = vector.load %arg6[%c3, %c0_19] : memref<8x128xf32, #tpu.memory_space<vmem>>, vector<1x128xf32>
    %29 = vector.broadcast %28 : vector<1x128xf32> to vector<8x128xf32>
    %30 = arith.addf %27, %29 : vector<8x128xf32>
    %cst_20 = arith.constant 0.000000e+00 : f32
    %31 = vector.broadcast %cst_20 : f32 to vector<8x128xf32>
    %32 = arith.maximumf %30, %31 : vector<8x128xf32>
    %c0_21 = arith.constant 0 : index
    %c0_22 = arith.constant 0 : index
    %33 = vector.load %arg7[%c0_21, %c0_22] : memref<8x128xf32, #tpu.memory_space<vmem>>, vector<8x128xf32>
    tpu.vector_store %arg7[%c0_21, %c0_22], %32 {strides = array<i32>} : memref<8x128xf32, #tpu.memory_space<vmem>>, vector<8x128xf32>,
    return
  }
  func.func @transform_0(%arg0: i32) -> (i32, i32) {
    %c0_i32 = arith.constant 0 : i32
    %c0_i32_0 = arith.constant 0 : i32
    return %arg0, %c0_i32 : i32, i32
  }
  func.func @transform_1(%arg0: i32) -> (i32, i32) {
    %c0_i32 = arith.constant 0 : i32
    %c0_i32_0 = arith.constant 0 : i32
    %c0_i32_1 = arith.constant 0 : i32
    return %c0_i32, %c0_i32_0 : i32, i32
  }
  func.func @transform_2(%arg0: i32) -> (i32, i32) {
    %c0_i32 = arith.constant 0 : i32
    %c0_i32_0 = arith.constant 0 : i32
    %c0_i32_1 = arith.constant 0 : i32
    return %c0_i32, %c0_i32_0 : i32, i32
  }
  func.func @transform_3(%arg0: i32) -> (i32, i32) {
    %c0_i32 = arith.constant 0 : i32
    %c0_i32_0 = arith.constant 0 : i32
    %c0_i32_1 = arith.constant 0 : i32
    return %c0_i32, %c0_i32_0 : i32, i32
  }
  func.func @transform_4(%arg0: i32) -> (i32, i32) {
    %c0_i32 = arith.constant 0 : i32
    %c0_i32_0 = arith.constant 0 : i32
    %c0_i32_1 = arith.constant 0 : i32
    return %c0_i32, %c0_i32_0 : i32, i32
  }
  func.func @transform_5(%arg0: i32) -> (i32, i32) {
    %c0_i32 = arith.constant 0 : i32
    %c0_i32_0 = arith.constant 0 : i32
    %c0_i32_1 = arith.constant 0 : i32
    return %c0_i32, %c0_i32_0 : i32, i32
  }
  func.func @transform_6(%arg0: i32) -> (i32, i32) {
    %c0_i32 = arith.constant 0 : i32
    %c0_i32_0 = arith.constant 0 : i32
    return %arg0, %c0_i32 : i32, i32
  }
}

</mosaic_0001>

<bundles_post_ra>
// kernel: tpu_custom_call.1
= control target key start
LH: loop header
LB: loop body
LE: loop exit
PB: predicated region body
PF: predicated region fallthrough
CT: control target
= control target key end

     0   :  { %11 = vsyncpa [#allocation3], 0  ;;  %s924_s0 = inlined_call_operand.hbm [shape: f32[8,32], index: 0, kind: input, shape index: {}]   ;;  %s925_s1 = inlined_call_operand.hbm [shape: bf16[32,128], index: 1, kind: input, shape index: {}]   ;;  %s926_s2 = inlined_call_operand.hbm [shape: bf16[128,128], index: 2, kind: input, shape index: {}]   ;;  %s927_s3 = inlined_call_operand.hbm [shape: bf16[128,128], index: 3, kind: input, shape index: {}]   ;;  %s928_s4 = inlined_call_operand.hbm [shape: bf16[128,128], index: 4, kind: input, shape index: {}]   ;;  %s929_s5 = inlined_call_operand.vmem [shape: f32[8,128], index: 5, kind: input, shape index: {}]   ;;  %s930_s6 = inlined_call_operand.hbm [shape: f32[8,128], index: 6, kind: output, shape index: {}]  }
   0x1   :  { %12 = vsyncpa [#allocation6], 0 }
   0x2   :  { %13 = vsyncpa [#allocation9], 0 }
   0x3   :  { %14 = vsyncpa [#allocation4], 0  ;;  %s803_s21 = smov [#allocation5]  }
   0x4   :  { %s30_s22 = sshll.u32 %s803_s21, 4  ;;  %s31_s22 = int_to_ptr.vmem [resolvable:$true] %s30_s22 }
   0x5   :  { %s683_s23 = scalar_lea.vmem %s31_s22, 256  ;;  %p688_p1 = scmp.lt.s32.totalorder %s31_s22, %s31_s22 }
   0x6   :  { %p684_p0 = scmp.ne.s32.totalorder %s31_s22, %s683_s23  ;;  %p689_p2 = scmp.lt.s32.totalorder %s683_s23, %s683_s23 }
   0x8   :  { %p690_p3 = por %p689_p2, %p688_p1 }
   0xa   :  { %p691_p4 = pnand %p690_p3, %p684_p0 }
   0xc   :  { %694 = shalt.err (!%p691_p4)
}
   0xd   :  { %s804_s24 = smov 64   ;;  %s805_s25 = smov 4  }
   0xe   :  { %36 = dma.hbm_to_vmem [thread:$0]  %s925_s1, 256, %s31_s22, [#allocation6], %s804_s24, %s804_s24, %s805_s25  }
   0xf   :  { %s806_s28 = smov [#allocation8]   ;;  %s807_s30 = smov [#allocation2]  }
  0x10   :  { %s54_s29 = sshll.u32 %s806_s28, 4  ;;  %s21_s7 = sshll.u32 %s807_s30, 4  ;;  %s55_s29 = int_to_ptr.vmem [resolvable:$true] %s54_s29  ;;  %s22_s7 = int_to_ptr.vmem [resolvable:$true] %s21_s7 }
  0x11   :  { %s703_s8 = scalar_lea.vmem %s55_s29, 1024  ;;  %p708_p6 = scmp.lt.s32.totalorder %s55_s29, %s55_s29 }
  0x12   :  { %p704_p5 = scmp.ne.s32.totalorder %s55_s29, %s703_s8  ;;  %p709_p7 = scmp.lt.s32.totalorder %s703_s8, %s703_s8 }
  0x14   :  { %p710_p8 = por %p709_p7, %p708_p6 }
  0x16   :  { %p711_p9 = pnand %p710_p8, %p704_p5 }
  0x18   :  { %714 = shalt.err (!%p711_p9)
}
  0x19   :  { %60 = dma.hbm_to_vmem [thread:$0]  %s927_s3, 1024, %s55_s29, [#allocation9], %s804_s24, %s804_s24, %s805_s25  }
  0x1a   :  { %s723_s1 = scalar_lea.vmem %s22_s7, 128  ;;  %p728_p11 = scmp.lt.s32.totalorder %s22_s7, %s22_s7 }
  0x1b   :  { %p724_p10 = scmp.ne.s32.totalorder %s22_s7, %s723_s1  ;;  %p729_p12 = scmp.lt.s32.totalorder %s723_s1, %s723_s1 }
  0x1d   :  { %p730_p13 = por %p729_p12, %p728_p11 }
  0x1f   :  { %p731_p0 = pnand %p730_p13, %p724_p10 }
  0x21   :  { %734 = shalt.err (!%p731_p0)
}
  0x22   :  { %24 = dma.hbm_to_vmem [thread:$0]  %s924_s0, 128, %s22_s7, [#allocation3]  }
  0x23   :  { %s808_s13 = smov [#allocation7]   ;;  %s809_s15 = smov [#allocation10]  }
  0x24   :  { %s42_s14 = sshll.u32 %s808_s13, 4  ;;  %s66_s16 = sshll.u32 %s809_s15, 4  ;;  %s43_s14 = int_to_ptr.vmem [resolvable:$true] %s42_s14  ;;  %s67_s16 = int_to_ptr.vmem [resolvable:$true] %s66_s16 }
  0x25   :  { %s743_s17 = scalar_lea.vmem %s43_s14, 1024  ;;  %p748_p2 = scmp.lt.s32.totalorder %s43_s14, %s43_s14 }
  0x26   :  { %p744_p1 = scmp.ne.s32.totalorder %s43_s14, %s743_s17  ;;  %p749_p3 = scmp.lt.s32.totalorder %s743_s17, %s743_s17 }
  0x28   :  { %p750_p4 = por %p749_p3, %p748_p2 }
  0x2a   :  { %p751_p5 = pnand %p750_p4, %p744_p1 }
  0x2c   :  { %754 = shalt.err (!%p751_p5)
}
  0x2d   :  { %48 = dma.hbm_to_vmem [thread:$0]  %s926_s2, 1024, %s43_s14, [#allocation6], %s804_s24, %s804_s24, %s805_s25  }
  0x2e   :  { %s763_s0 = scalar_lea.vmem %s67_s16, 1024  ;;  %p768_p7 = scmp.lt.s32.totalorder %s67_s16, %s67_s16 }
  0x2f   :  { %p764_p6 = scmp.ne.s32.totalorder %s67_s16, %s763_s0  ;;  %p769_p8 = scmp.lt.s32.totalorder %s763_s0, %s763_s0 }
  0x31   :  { %p770_p9 = por %p769_p8, %p768_p7 }
  0x33   :  { %p771_p10 = pnand %p770_p9, %p764_p6 }
  0x35   :  { %774 = shalt.err (!%p771_p10)
}
  0x36   :  { %72 = dma.hbm_to_vmem [thread:$0]  %s928_s4, 1024, %s67_s16, [#allocation9], %s804_s24, %s804_s24, %s805_s25  }
  0x37   :  { %795 = dma.done.wait [#allocation3], 128  }
  0x38   :  { %796 = vsyncadd [#allocation3], 4294967168 }
  0x39   :  { %797 = dma.done.wait [#allocation6], 1280  }
  0x3a   :  { %798 = vsyncadd [#allocation6], 4294966016 }
  0x3b   :  { %799 = dma.done.wait [#allocation9], 2048  }
  0x3c   :  { %800 = vsyncadd [#allocation9], 4294965248  ;;  %v810_v0 = vmov 0.0   ;;  %vm811_vm0 = vmmov 0   ;;  %v649_v1 = vld [vmem:[#allocation5 + $0x8] sm:$0xff]   ;;  %v650_v2 = vld [vmem:[#allocation5] sm:$0xff]  }
  0x3d   :  { %571 = vmatprep.subr.bf16.mxu0 %v810_v0  ;;  %575 = vmatprep.mubr.msk.bf16.mxu0 %vm811_vm0, %v810_v0  ;;  %v91_v3 = vld [vmem:[#allocation2] sm:$0xff]  ;;  %v651_v4 = vld [vmem:[#allocation7 + $0x38] sm:$0xff]   ;;  %v652_v6 = vld [vmem:[#allocation7 + $0x30] sm:$0xff]   ;;  %vm114_vm1 = vcmask 261120   ;;  %s812_s27 = smov [#allocation11]  }
  0x3e   :  { %579 = vmatprep.subr.bf16.mxu1 %v810_v0  ;;  %595 = vmatprep.mubr.msk.bf16.mxu1 %vm811_vm0, %v810_v0  ;;  %v92_v5 = vpack.c.bf16 %v91_v3, %v91_v3  ;;  %v653_v7 = vld [vmem:[#allocation7 + $0x28] sm:$0xff]   ;;  %v654_v8 = vld [vmem:[#allocation7 + $0x20] sm:$0xff]   ;;  %v655_v9 = vld [vmem:[#allocation7 + $0x18] sm:$0xff]   ;;  %s499_s28 = sshll.u32 %s812_s27, 4  ;;  %s500_s28 = int_to_ptr.vmem [resolvable:$true] %s499_s28 }
  0x3f   :  { %572 = vmatpush3.bf16.msra.mxu0 %v649_v1  ;;  %580 = vmatpush3.bf16.msra.mxu1 %v651_v4  ;;  %v656_v10 = vld [vmem:[#allocation7 + $0x10] sm:$0xff]   ;;  %v657_v11 = vld [vmem:[#allocation7 + $0x8] sm:$0xff]   ;;  %v658_v12 = vld [vmem:[#allocation7] sm:$0xff]   ;;  %s775_s29 = scalar_lea.vmem %s500_s28, 128  ;;  %p780_p12 = scmp.lt.s32.totalorder %s500_s28, %s500_s28 }
  0x40   :  { %573 = vmatprep.subr.bf16.mxu0 %v810_v0  ;;  %581 = vmatprep.subr.bf16.mxu1 %v810_v0  ;;  %v659_v13 = vld [vmem:[#allocation8 + $0x38] sm:$0xff]   ;;  %v660_v14 = vld [vmem:[#allocation8 + $0x30] sm:$0xff]   ;;  %v661_v15 = vld [vmem:[#allocation8 + $0x28] sm:$0xff]   ;;  %p776_p11 = scmp.ne.s32.totalorder %s500_s28, %s775_s29  ;;  %p781_p13 = scmp.lt.s32.totalorder %s775_s29, %s775_s29 }
  0x41   :  { %v662_v16 = vld [vmem:[#allocation8 + $0x20] sm:$0xff]   ;;  %v663_v17 = vld [vmem:[#allocation8 + $0x18] sm:$0xff]   ;;  %v664_v18 = vld [vmem:[#allocation8 + $0x10] sm:$0xff]  }
  0x42   :  { %v510_v19 = vld [vmem:[%s929_s5] ss:$0 sm:$0xff]  ;;  %v666_v28 = vld [vmem:[#allocation8] sm:$0xff]   ;;  %v667_v29 = vld [vmem:[#allocation10 + $0x38] sm:$0xff]   ;;  %p782_p0 = por %p781_p13, %p780_p12 }
  0x43   :  { %574 = vmatpush3.bf16.msra.mxu0 %v650_v2  ;;  %582 = vmatpush3.bf16.msra.mxu1 %v652_v6  ;;  %v665_v27 = vld [vmem:[#allocation8 + $0x8] sm:$0xff]   ;;  %v668_v30 = vld [vmem:[#allocation10 + $0x30] sm:$0xff]   ;;  %v670_v32 = vld [vmem:[#allocation10 + $0x20] sm:$0xff]  }
  0x44   :  { %599 = vmatprep.subr.bf16.mxu0 %v810_v0  ;;  %583 = vmatprep.subr.bf16.mxu1 %v810_v0  ;;  %v669_v31 = vld [vmem:[#allocation10 + $0x28] sm:$0xff]   ;;  %v671_v33 = vld [vmem:[#allocation10 + $0x18] sm:$0xff]   ;;  %v672_v34 = vld [vmem:[#allocation10 + $0x10] sm:$0xff]   ;;  %p783_p1 = pnand %p782_p0, %p776_p11 }
  0x45   :  { %v514_v35 = vld [vmem:[%s929_s5 + $0x1] ss:$0 sm:$0xff]  ;;  %v674_v44 = vld [vmem:[#allocation10] sm:$0xff]   ;;  %v523_v45 = vld [vmem:[%s929_s5 + $0x2] ss:$0 sm:$0xff] }
  0x46   :  { %576 = vmatmul.mubr.msk.bf16.vlgmr.msra.gmra.mxu0 %vm114_vm1, %v92_v5  ;;  %v673_v43 = vld [vmem:[#allocation10 + $0x8] sm:$0xff]  }
  0x47   :  { %615 = vmatprep.mubr.msk.bf16.mxu0 %vm811_vm0, %v810_v0  ;;  %584 = vmatpush3.bf16.msra.mxu1 %v653_v7  ;;  %v532_v53 = vld [vmem:[%s929_s5 + $0x3] ss:$0 sm:$0xff] }
  0x48   :  { %585 = vmatprep.subr.bf16.mxu1 %v810_v0  ;;  %600 = vmatpush3.bf16.msra.mxu0 %v659_v13 }
  0x49   :  { %601 = vmatprep.subr.bf16.mxu0 %v810_v0 }
  0x4b   :  { %586 = vmatpush3.bf16.msra.mxu1 %v654_v8 }
  0x4c   :  { %587 = vmatprep.subr.bf16.mxu1 %v810_v0  ;;  %602 = vmatpush3.bf16.msra.mxu0 %v660_v14 }
  0x4d   :  { %603 = vmatprep.subr.bf16.mxu0 %v810_v0 }
  0x4f   :  { %588 = vmatpush3.bf16.msra.mxu1 %v655_v9 }
  0x50   :  { %589 = vmatprep.subr.bf16.mxu1 %v810_v0  ;;  %604 = vmatpush3.bf16.msra.mxu0 %v661_v15 }
  0x51   :  { %605 = vmatprep.subr.bf16.mxu0 %v810_v0 }
  0x53   :  { %590 = vmatpush3.bf16.msra.mxu1 %v656_v10 }
  0x54   :  { %591 = vmatprep.subr.bf16.mxu1 %v810_v0  ;;  %606 = vmatpush3.bf16.msra.mxu0 %v662_v16 }
  0x55   :  { %607 = vmatprep.subr.bf16.mxu0 %v810_v0 }
  0x57   :  { %592 = vmatpush3.bf16.msra.mxu1 %v657_v11 }
  0x58   :  { %593 = vmatprep.subr.bf16.mxu1 %v810_v0  ;;  %608 = vmatpush3.bf16.msra.mxu0 %v663_v17 }
  0x59   :  { %609 = vmatprep.subr.bf16.mxu0 %v810_v0 }
  0x5b   :  { %594 = vmatpush3.bf16.msra.mxu1 %v658_v12 }
  0x5c   :  { %619 = vmatprep.subr.bf16.mxu1 %v810_v0  ;;  %610 = vmatpush3.bf16.msra.mxu0 %v664_v18 }
  0x5d   :  { %611 = vmatprep.subr.bf16.mxu0 %v810_v0 }
  0x60   :  { %612 = vmatpush3.bf16.msra.mxu0 %v665_v27 }
  0x61   :  { %613 = vmatprep.subr.bf16.mxu0 %v810_v0 }
  0x64   :  { %614 = vmatpush3.bf16.msra.mxu0 %v666_v28 }
 0x106   :  { %v152_v20 = vpop.f32.mrf.mxu0 }
 0x107   :  { %v153_v21 = vadd.f32 %v510_v19, %v152_v20 }
 0x108   :  { %v577_v22 = vpop.f32.mrf.mxu0 }
 0x109   :  { %v158_v23 = vmax.f32 %v153_v21, 0.0 }
 0x10a   :  { %v155_v24 = vpop.f32.mrf.mxu0 }
 0x10b   :  { %v159_v25 = vpack.c.bf16 %v158_v23, %v158_v23 }
 0x10c   :  { %v578_v26 = vpop.f32.mrf.mxu0 }
 0x10d   :  { %596 = vmatmul.mubr.bf16.vlgmr.msra.gmra.mxu1 %v159_v25 }
 0x10e   :  { %635 = vmatprep.mubr.msk.bf16.mxu1 %vm811_vm0, %v810_v0  ;;  %620 = vmatpush3.bf16.msra.mxu1 %v667_v29 }
 0x10f   :  { %621 = vmatprep.subr.bf16.mxu1 %v810_v0 }
 0x112   :  { %622 = vmatpush3.bf16.msra.mxu1 %v668_v30 }
 0x113   :  { %623 = vmatprep.subr.bf16.mxu1 %v810_v0 }
 0x116   :  { %624 = vmatpush3.bf16.msra.mxu1 %v669_v31 }
 0x117   :  { %625 = vmatprep.subr.bf16.mxu1 %v810_v0 }
 0x11a   :  { %626 = vmatpush3.bf16.msra.mxu1 %v670_v32 }
 0x11b   :  { %627 = vmatprep.subr.bf16.mxu1 %v810_v0 }
 0x11e   :  { %628 = vmatpush3.bf16.msra.mxu1 %v671_v33 }
 0x11f   :  { %629 = vmatprep.subr.bf16.mxu1 %v810_v0 }
 0x122   :  { %630 = vmatpush3.bf16.msra.mxu1 %v672_v34 }
 0x123   :  { %631 = vmatprep.subr.bf16.mxu1 %v810_v0 }
 0x126   :  { %632 = vmatpush3.bf16.msra.mxu1 %v673_v43 }
 0x127   :  { %633 = vmatprep.subr.bf16.mxu1 %v810_v0 }
 0x12a   :  { %634 = vmatpush3.bf16.msra.mxu1 %v674_v44 }
 0x1cd   :  { %v263_v36 = vpop.f32.mrf.mxu1 }
 0x1ce   :  { %v264_v37 = vadd.f32 %v514_v35, %v263_v36 }
 0x1cf   :  { %v597_v38 = vpop.f32.mrf.mxu1 }
 0x1d0   :  { %v269_v39 = vmax.f32 %v264_v37, 0.0 }
 0x1d1   :  { %v266_v40 = vpop.f32.mrf.mxu1 }
 0x1d2   :  { %v270_v41 = vpack.c.bf16 %v269_v39, %v269_v39 }
 0x1d3   :  { %v598_v42 = vpop.f32.mrf.mxu1 }
 0x1d4   :  { %616 = vmatmul.mubr.bf16.vlgmr.msra.gmra.mxu0 %v270_v41 }
 0x294   :  { %v374_v46 = vpop.f32.mrf.mxu0 }
 0x295   :  { %v375_v47 = vadd.f32 %v523_v45, %v374_v46 }
 0x296   :  { %v617_v48 = vpop.f32.mrf.mxu0 }
 0x297   :  { %v380_v49 = vmax.f32 %v375_v47, 0.0 }
 0x298   :  { %v377_v50 = vpop.f32.mrf.mxu0 }
 0x299   :  { %v381_v51 = vpack.c.bf16 %v380_v49, %v380_v49 }
 0x29a   :  { %v618_v52 = vpop.f32.mrf.mxu0 }
 0x29b   :  { %636 = vmatmul.mubr.bf16.vlgmr.msra.gmra.mxu1 %v381_v51 }
 0x35b   :  { %v485_v54 = vpop.f32.mrf.mxu1 }
 0x35c   :  { %v486_v55 = vadd.f32 %v532_v53, %v485_v54 }
 0x35d   :  { %v637_v56 = vpop.f32.mrf.mxu1 }
 0x35e   :  { %v491_v57 = vmax.f32 %v486_v55, 0.0 }
 0x35f   :  { %v488_v58 = vpop.f32.mrf.mxu1 }
 0x360   :  { %492 = vst [vmem:[#allocation11] sm:$0xff] %v491_v57 }
 0x361   :  { %v638_v59 = vpop.f32.mrf.mxu1 }
 0x362   :  { %786 = shalt.err (!%p783_p1)
}
 0x363   :  { %502 = dma.vmem_to_hbm [thread:$0]  %s500_s28, 128, %s930_s6, [#allocation4]  }
 0x364   :  { %801 = dma.done.wait [#allocation4], 128  }
 0x365   :  { %802 = vsyncadd [#allocation4], 4294967168 }
 0x366   :  { %506 = vsyncpa [#allocation3], 1 }
 0x367   :  { %507 = vsyncpa [#allocation6], 1 }
 0x368   :  { %508 = vsyncpa [#allocation9], 1 }
 0x369   :  { %509 = vsyncpa [#allocation4], 1 }

</bundles_post_ra>
